<compile_context>
chip_gen: v7x
topology: tpu7x:2x2x1
jax: 0.10.0
libtpu: 0.0.40
codegen_flags: <defaults>
</compile_context>

<pallas_src>
import functools

import jax
import jax.numpy as jnp
from jax.experimental import pallas as pl
from jax.experimental.pallas import tpu as pltpu

LANE = 128
SUBLANE = 8


def _round_up(n, m):
    return ((n + m - 1) // m) * m


# ----------------------------------------------------------------------------
# Fused kernel: all layers unrolled, weights resident in VMEM, activations in
# vregs. refs layout: x_ref, w0, b0, w1, b1, ..., w{L-1}, b{L-1}, o_ref.
# ----------------------------------------------------------------------------
def _fused_mlp_kernel(x_ref, *refs, num_layers, slope):
    w_refs = refs[0:2 * num_layers:2]          # bf16 weights, true (K, N)
    b_refs = refs[1:2 * num_layers:2]          # f32 biases, (1, N)
    o_ref = refs[2 * num_layers]

    h = x_ref[...]                             # (Bb, F) f32
    for i in range(num_layers):
        # bf16 operands, f32 accumulation on the MXU.
        y = jnp.dot(h.astype(jnp.bfloat16), w_refs[i][...],
                    preferred_element_type=jnp.float32)
        y = y + b_refs[i][...]                 # f32 bias broadcast (VPU)
        if i < num_layers - 1:
            y = jnp.maximum(y, slope * y)      # LeakyReLU(0.01) in f32
        h = y
    o_ref[...] = h.astype(o_ref.dtype)


def _vmem_budget_bytes(block_b, k0, n_last, prepped_params):
    """Explicit VMEM budget: double-buffered acts in/out + resident weights
    (default double-buffered) + live f32 intermediates, with 50% margin."""
    act = 2 * block_b * k0 * 4 + 2 * block_b * n_last * 4
    wgt = sum(2 * (w.size * w.dtype.itemsize + b.size * b.dtype.itemsize)
              for (w, b) in prepped_params)
    widest = max(w.shape[1] for (w, _) in prepped_params)
    inter = 4 * block_b * widest * 4           # a few live f32 intermediates
    budget = int((act + wgt + inter) * 1.5)
    # Floor at the common 32 MiB scoped default; cap at 64 MiB (v7x physical).
    return min(max(budget, 32 * 1024 * 1024), 64 * 1024 * 1024)


def fused_mlp(x, prepped_params, *, slope, block_b):
    """x: (Bp, F) f32; prepped_params: list of ((K,N) bf16 w, (1,N) f32 b)."""
    Bp, K0 = x.shape
    num_layers = len(prepped_params)
    N_last = prepped_params[-1][0].shape[1]
    assert Bp % block_b == 0
    grid = (Bp // block_b,)

    in_specs = [pl.BlockSpec((block_b, K0), lambda i: (i, 0))]
    flat_params = []
    for (w, b) in prepped_params:
        # Constant block index -> weight/bias loaded once, stays resident
        # across the batch grid; only activations stream.
        in_specs.append(pl.BlockSpec(w.shape, lambda i: (0, 0)))
        in_specs.append(pl.BlockSpec(b.shape, lambda i: (0, 0)))
        flat_params.extend([w, b])

    kernel = functools.partial(_fused_mlp_kernel,
                               num_layers=num_layers, slope=slope)
    return pl.pallas_call(
        kernel,
        out_shape=jax.ShapeDtypeStruct((Bp, N_last), jnp.float32),
        grid=grid,
        in_specs=in_specs,
        out_specs=pl.BlockSpec((block_b, N_last), lambda i: (i, 0)),
        compiler_params=pltpu.CompilerParams(
            dimension_semantics=("parallel",),   # batch shards across TCs (v7x)
            vmem_limit_bytes=_vmem_budget_bytes(block_b, K0, N_last,
                                                prepped_params)),
    )(x, *flat_params)


# ----------------------------------------------------------------------------
# Block-size selection: large tiles, bounded batch-padding waste, grid >= 2
# when the batch allows it (so v7x megacore sharding is real, not a no-op).
# ----------------------------------------------------------------------------
def _pick_block_b(B):
    bb = SUBLANE
    for cand in (512, 256, 128, 64, 32, 16, 8):
        pad = _round_up(B, cand) - B
        if pad * 10 <= B:                      # <=10% padding overhead
            bb = cand
            break
    # Prefer at least 2 grid steps so the "parallel" axis can use both v7x TCs.
    while bb > SUBLANE and _round_up(B, bb) // bb < 2:
        bb //= 2
    return bb


# ----------------------------------------------------------------------------
# Jitted forward wrapper: (maybe) pad batch, run fused kernel, slice result.
# ----------------------------------------------------------------------------
@functools.partial(jax.jit, static_argnames=("num_classes", "slope"))
def fully_connected_forward(x, prepped_params, num_classes, slope=0.01):
    B, F = x.shape
    K0 = prepped_params[0][0].shape[0]
    assert F == K0, (F, K0)
    bb = _pick_block_b(B)
    Bp = _round_up(B, bb)
    if Bp != B:
        x_in = jnp.zeros((Bp, F), x.dtype).at[:B].set(x)
    else:
        x_in = x                                # no extra HBM copy
    out_pad = fused_mlp(x_in, prepped_params, slope=slope, block_b=bb)
    return out_pad[:B, :num_classes]


# ----------------------------------------------------------------------------
# Parameter construction (deterministic, mirrors init_weights):
#   weight ~ xavier_uniform, bias = 0.01
# ----------------------------------------------------------------------------
def _xavier_uniform(key, fan_out, fan_in):
    bound = (6.0 / (fan_in + fan_out)) ** 0.5
    # PyTorch stores Linear weight as (out, in); sample that, transpose later.
    return jax.random.uniform(
        key, (fan_out, fan_in), minval=-bound, maxval=bound, dtype=jnp.float32)


def _layer_dims(in_features, num_classes, num_layers):
    assert num_layers % 2 == 1, "Please give an odd number of layers"
    half = num_layers // 2
    dims = []
    for i in range(half):
        dims.append((in_features * 2 ** i, in_features * 2 ** (i + 1)))
    for i in reversed(range(half)):
        dims.append((in_features * 2 ** (i + 1), in_features * 2 ** i))
    dims.append((in_features, num_classes))
    return dims


def build_params(key, in_features, num_classes, num_layers=7):
    """Unpadded f32 params: list of ((K,N) weight, (1,N) bias), (in,out) layout."""
    params = []
    for (fan_in, fan_out) in _layer_dims(in_features, num_classes, num_layers):
        key, sub = jax.random.split(key)
        w_pt = _xavier_uniform(sub, fan_out, fan_in)          # (out, in) like torch
        w = jnp.transpose(w_pt)                               # (in, out) for kernel
        b = jnp.full((1, fan_out), 0.01, dtype=jnp.float32)
        params.append((w, b))
    return params


def prepare_params(params):
    """Kernel-ready params: bf16 weights at true (K, N); only the LAST layer's
    N (num_classes) is zero-padded to a multiple of 128 for lane-dense output
    stores. Biases stay f32."""
    prepped = []
    last = len(params) - 1
    for i, (w, b) in enumerate(params):
        K, N = w.shape
        if i == last:
            Np = _round_up(N, LANE)
            wp = jnp.zeros((K, Np), jnp.float32).at[:, :N].set(w)
            bp = jnp.zeros((1, Np), jnp.float32).at[:, :N].set(b)
        else:
            wp, bp = w, b
        prepped.append((wp.astype(jnp.bfloat16), bp.astype(jnp.float32)))
    return prepped


# ----------------------------------------------------------------------------
# Reference in plain JAX (f32, unpadded) for a sanity check.
# ----------------------------------------------------------------------------
def fully_connected_ref(x, params, *, slope=0.01):
    n = len(params)
    for idx, (w, b) in enumerate(params):
        x = x @ w + b
        if idx < n - 1:
            x = jnp.maximum(x, slope * x)
    return x


if __name__ == "__main__":
    in_features = 32
    num_classes = 10

    key = jax.random.PRNGKey(0)
    key_x, key_x2, key_p = jax.random.split(key, 3)

    params = build_params(key_p, in_features, num_classes)
    prepped_params = prepare_params(params)

    # Small latency-bound case (block_b = 8, no batch padding).
    x_small = jax.random.normal(key_x, (8, in_features), dtype=jnp.float32)
    out_small = fully_connected_forward(x_small, prepped_params,
                                        num_classes=num_classes)
    out_small = jax.block_until_ready(out_small)
    ref_small = fully_connected_ref(x_small, params)
    assert out_small.shape == (8, num_classes), out_small.shape
    assert jnp.allclose(out_small, ref_small, atol=5e-2, rtol=5e-2), \
        "mismatch vs reference (small batch)"

    # Larger case exercising block-size selection + batch padding path.
    x_large = jax.random.normal(key_x2, (200, in_features), dtype=jnp.float32)
    out_large = fully_connected_forward(x_large, prepped_params,
                                        num_classes=num_classes)
    out_large = jax.block_until_ready(out_large)
    ref_large = fully_connected_ref(x_large, params)
    assert out_large.shape == (200, num_classes), out_large.shape
    assert jnp.allclose(out_large, ref_large, atol=5e-2, rtol=5e-2), \
        "mismatch vs reference (large batch)"

    print("KERNEL_OK")
</pallas_src>

<mosaic_0001>
module attributes {stable_mosaic.version = 11 : i64} {
  func.func @_fused_mlp_kernel(%arg0: i32, %arg1: memref<8x32xf32, #tpu.memory_space<vmem>>, %arg2: memref<32x64xbf16, #tpu.memory_space<vmem>>, %arg3: memref<1x64xf32, #tpu.memory_space<vmem>>, %arg4: memref<64x128xbf16, #tpu.memory_space<vmem>>, %arg5: memref<1x128xf32, #tpu.memory_space<vmem>>, %arg6: memref<128x256xbf16, #tpu.memory_space<vmem>>, %arg7: memref<1x256xf32, #tpu.memory_space<vmem>>, %arg8: memref<256x128xbf16, #tpu.memory_space<vmem>>, %arg9: memref<1x128xf32, #tpu.memory_space<vmem>>, %arg10: memref<128x64xbf16, #tpu.memory_space<vmem>>, %arg11: memref<1x64xf32, #tpu.memory_space<vmem>>, %arg12: memref<64x32xbf16, #tpu.memory_space<vmem>>, %arg13: memref<1x32xf32, #tpu.memory_space<vmem>>, %arg14: memref<32x128xbf16, #tpu.memory_space<vmem>>, %arg15: memref<1x128xf32, #tpu.memory_space<vmem>>, %arg16: memref<8x128xf32, #tpu.memory_space<vmem>>) attributes {dimension_semantics = [#tpu.dimension_semantics<parallel>], iteration_bounds = array<i64: 1>, scalar_prefetch = 0 : i64, scratch_operands = 0 : i64, tpu.core_type = #tpu.core_type<tc>, window_params = [{transform_indices = @transform_0, window_bounds = array<i64: 8, 32>}, {pipeline_mode = #tpu.pipeline_mode<synchronous>, transform_indices = @transform_1, window_bounds = array<i64: 32, 64>}, {pipeline_mode = #tpu.pipeline_mode<synchronous>, transform_indices = @transform_2, window_bounds = array<i64: 1, 64>}, {pipeline_mode = #tpu.pipeline_mode<synchronous>, transform_indices = @transform_3, window_bounds = array<i64: 64, 128>}, {pipeline_mode = #tpu.pipeline_mode<synchronous>, transform_indices = @transform_4, window_bounds = array<i64: 1, 128>}, {pipeline_mode = #tpu.pipeline_mode<synchronous>, transform_indices = @transform_5, window_bounds = array<i64: 128, 256>}, {pipeline_mode = #tpu.pipeline_mode<synchronous>, transform_indices = @transform_6, window_bounds = array<i64: 1, 256>}, {pipeline_mode = #tpu.pipeline_mode<synchronous>, transform_indices = @transform_7, window_bounds = array<i64: 256, 128>}, {pipeline_mode = #tpu.pipeline_mode<synchronous>, transform_indices = @transform_8, window_bounds = array<i64: 1, 128>}, {pipeline_mode = #tpu.pipeline_mode<synchronous>, transform_indices = @transform_9, window_bounds = array<i64: 128, 64>}, {pipeline_mode = #tpu.pipeline_mode<synchronous>, transform_indices = @transform_10, window_bounds = array<i64: 1, 64>}, {pipeline_mode = #tpu.pipeline_mode<synchronous>, transform_indices = @transform_11, window_bounds = array<i64: 64, 32>}, {pipeline_mode = #tpu.pipeline_mode<synchronous>, transform_indices = @transform_12, window_bounds = array<i64: 1, 32>}, {pipeline_mode = #tpu.pipeline_mode<synchronous>, transform_indices = @transform_13, window_bounds = array<i64: 32, 128>}, {pipeline_mode = #tpu.pipeline_mode<synchronous>, transform_indices = @transform_14, window_bounds = array<i64: 1, 128>}, {transform_indices = @transform_15, window_bounds = array<i64: 8, 128>}]} {
    %c0 = arith.constant 0 : index
    %c0_0 = arith.constant 0 : index
    %0 = vector.load %arg1[%c0, %c0_0] : memref<8x32xf32, #tpu.memory_space<vmem>>, vector<8x32xf32>
    %1 = arith.truncf %0 : vector<8x32xf32> to vector<8x32xbf16>
    %c0_1 = arith.constant 0 : index
    %c0_2 = arith.constant 0 : index
    %2 = vector.load %arg2[%c0_1, %c0_2] : memref<32x64xbf16, #tpu.memory_space<vmem>>, vector<32x64xbf16>
    %cst = arith.constant dense<0.000000e+00> : vector<8x64xf32>
    %3 = tpu.matmul %1, %2, %cst {dimension_numbers = #tpu.dot_dimension_numbers<[1], [0], [0], [1], [0, 0, 1, 1], [], []>} : vector<8x32xbf16>, vector<32x64xbf16>, vector<8x64xf32> -> vector<8x64xf32>
    %c0_3 = arith.constant 0 : index
    %c0_4 = arith.constant 0 : index
    %4 = vector.load %arg3[%c0_3, %c0_4] : memref<1x64xf32, #tpu.memory_space<vmem>>, vector<1x64xf32>
    %5 = vector.broadcast %4 : vector<1x64xf32> to vector<8x64xf32>
    %6 = arith.addf %3, %5 : vector<8x64xf32>
    %cst_5 = arith.constant 0.00999999977 : f32
    %7 = vector.broadcast %cst_5 : f32 to vector<8x64xf32>
    %8 = arith.mulf %7, %6 : vector<8x64xf32>
    %9 = arith.maximumf %6, %8 : vector<8x64xf32>
    %10 = arith.truncf %9 : vector<8x64xf32> to vector<8x64xbf16>
    %c0_6 = arith.constant 0 : index
    %c0_7 = arith.constant 0 : index
    %11 = vector.load %arg4[%c0_6, %c0_7] : memref<64x128xbf16, #tpu.memory_space<vmem>>, vector<64x128xbf16>
    %cst_8 = arith.constant dense<0.000000e+00> : vector<8x128xf32>
    %12 = tpu.matmul %10, %11, %cst_8 {dimension_numbers = #tpu.dot_dimension_numbers<[1], [0], [0], [1], [0, 0, 1, 1], [], []>} : vector<8x64xbf16>, vector<64x128xbf16>, vector<8x128xf32> -> vector<8x128xf32>
    %c0_9 = arith.constant 0 : index
    %c0_10 = arith.constant 0 : index
    %13 = vector.load %arg5[%c0_9, %c0_10] : memref<1x128xf32, #tpu.memory_space<vmem>>, vector<1x128xf32>
    %14 = vector.broadcast %13 : vector<1x128xf32> to vector<8x128xf32>
    %15 = arith.addf %12, %14 : vector<8x128xf32>
    %cst_11 = arith.constant 0.00999999977 : f32
    %16 = vector.broadcast %cst_11 : f32 to vector<8x128xf32>
    %17 = arith.mulf %16, %15 : vector<8x128xf32>
    %18 = arith.maximumf %15, %17 : vector<8x128xf32>
    %19 = arith.truncf %18 : vector<8x128xf32> to vector<8x128xbf16>
    %c0_12 = arith.constant 0 : index
    %c0_13 = arith.constant 0 : index
    %20 = vector.load %arg6[%c0_12, %c0_13] : memref<128x256xbf16, #tpu.memory_space<vmem>>, vector<128x256xbf16>
    %cst_14 = arith.constant dense<0.000000e+00> : vector<8x256xf32>
    %21 = tpu.matmul %19, %20, %cst_14 {dimension_numbers = #tpu.dot_dimension_numbers<[1], [0], [0], [1], [0, 0, 1, 1], [], []>} : vector<8x128xbf16>, vector<128x256xbf16>, vector<8x256xf32> -> vector<8x256xf32>
    %c0_15 = arith.constant 0 : index
    %c0_16 = arith.constant 0 : index
    %22 = vector.load %arg7[%c0_15, %c0_16] : memref<1x256xf32, #tpu.memory_space<vmem>>, vector<1x256xf32>
    %23 = vector.broadcast %22 : vector<1x256xf32> to vector<8x256xf32>
    %24 = arith.addf %21, %23 : vector<8x256xf32>
    %cst_17 = arith.constant 0.00999999977 : f32
    %25 = vector.broadcast %cst_17 : f32 to vector<8x256xf32>
    %26 = arith.mulf %25, %24 : vector<8x256xf32>
    %27 = arith.maximumf %24, %26 : vector<8x256xf32>
    %28 = arith.truncf %27 : vector<8x256xf32> to vector<8x256xbf16>
    %c0_18 = arith.constant 0 : index
    %c0_19 = arith.constant 0 : index
    %29 = vector.load %arg8[%c0_18, %c0_19] : memref<256x128xbf16, #tpu.memory_space<vmem>>, vector<256x128xbf16>
    %cst_20 = arith.constant dense<0.000000e+00> : vector<8x128xf32>
    %30 = tpu.matmul %28, %29, %cst_20 {dimension_numbers = #tpu.dot_dimension_numbers<[1], [0], [0], [1], [0, 0, 1, 1], [], []>} : vector<8x256xbf16>, vector<256x128xbf16>, vector<8x128xf32> -> vector<8x128xf32>
    %c0_21 = arith.constant 0 : index
    %c0_22 = arith.constant 0 : index
    %31 = vector.load %arg9[%c0_21, %c0_22] : memref<1x128xf32, #tpu.memory_space<vmem>>, vector<1x128xf32>
    %32 = vector.broadcast %31 : vector<1x128xf32> to vector<8x128xf32>
    %33 = arith.addf %30, %32 : vector<8x128xf32>
    %cst_23 = arith.constant 0.00999999977 : f32
    %34 = vector.broadcast %cst_23 : f32 to vector<8x128xf32>
    %35 = arith.mulf %34, %33 : vector<8x128xf32>
    %36 = arith.maximumf %33, %35 : vector<8x128xf32>
    %37 = arith.truncf %36 : vector<8x128xf32> to vector<8x128xbf16>
    %c0_24 = arith.constant 0 : index
    %c0_25 = arith.constant 0 : index
    %38 = vector.load %arg10[%c0_24, %c0_25] : memref<128x64xbf16, #tpu.memory_space<vmem>>, vector<128x64xbf16>
    %cst_26 = arith.constant dense<0.000000e+00> : vector<8x64xf32>
    %39 = tpu.matmul %37, %38, %cst_26 {dimension_numbers = #tpu.dot_dimension_numbers<[1], [0], [0], [1], [0, 0, 1, 1], [], []>} : vector<8x128xbf16>, vector<128x64xbf16>, vector<8x64xf32> -> vector<8x64xf32>
    %c0_27 = arith.constant 0 : index
    %c0_28 = arith.constant 0 : index
    %40 = vector.load %arg11[%c0_27, %c0_28] : memref<1x64xf32, #tpu.memory_space<vmem>>, vector<1x64xf32>
    %41 = vector.broadcast %40 : vector<1x64xf32> to vector<8x64xf32>
    %42 = arith.addf %39, %41 : vector<8x64xf32>
    %cst_29 = arith.constant 0.00999999977 : f32
    %43 = vector.broadcast %cst_29 : f32 to vector<8x64xf32>
    %44 = arith.mulf %43, %42 : vector<8x64xf32>
    %45 = arith.maximumf %42, %44 : vector<8x64xf32>
    %46 = arith.truncf %45 : vector<8x64xf32> to vector<8x64xbf16>
    %c0_30 = arith.constant 0 : index
    %c0_31 = arith.constant 0 : index
    %47 = vector.load %arg12[%c0_30, %c0_31] : memref<64x32xbf16, #tpu.memory_space<vmem>>, vector<64x32xbf16>
    %cst_32 = arith.constant dense<0.000000e+00> : vector<8x32xf32>
    %48 = tpu.matmul %46, %47, %cst_32 {dimension_numbers = #tpu.dot_dimension_numbers<[1], [0], [0], [1], [0, 0, 1, 1], [], []>} : vector<8x64xbf16>, vector<64x32xbf16>, vector<8x32xf32> -> vector<8x32xf32>
    %c0_33 = arith.constant 0 : index
    %c0_34 = arith.constant 0 : index
    %49 = vector.load %arg13[%c0_33, %c0_34] : memref<1x32xf32, #tpu.memory_space<vmem>>, vector<1x32xf32>
    %50 = vector.broadcast %49 : vector<1x32xf32> to vector<8x32xf32>
    %51 = arith.addf %48, %50 : vector<8x32xf32>
    %cst_35 = arith.constant 0.00999999977 : f32
    %52 = vector.broadcast %cst_35 : f32 to vector<8x32xf32>
    %53 = arith.mulf %52, %51 : vector<8x32xf32>
    %54 = arith.maximumf %51, %53 : vector<8x32xf32>
    %55 = arith.truncf %54 : vector<8x32xf32> to vector<8x32xbf16>
    %c0_36 = arith.constant 0 : index
    %c0_37 = arith.constant 0 : index
    %56 = vector.load %arg14[%c0_36, %c0_37] : memref<32x128xbf16, #tpu.memory_space<vmem>>, vector<32x128xbf16>
    %cst_38 = arith.constant dense<0.000000e+00> : vector<8x128xf32>
    %57 = tpu.matmul %55, %56, %cst_38 {dimension_numbers = #tpu.dot_dimension_numbers<[1], [0], [0], [1], [0, 0, 1, 1], [], []>} : vector<8x32xbf16>, vector<32x128xbf16>, vector<8x128xf32> -> vector<8x128xf32>
    %c0_39 = arith.constant 0 : index
    %c0_40 = arith.constant 0 : index
    %58 = vector.load %arg15[%c0_39, %c0_40] : memref<1x128xf32, #tpu.memory_space<vmem>>, vector<1x128xf32>
    %59 = vector.broadcast %58 : vector<1x128xf32> to vector<8x128xf32>
    %60 = arith.addf %57, %59 : vector<8x128xf32>
    %c0_41 = arith.constant 0 : index
    %c0_42 = arith.constant 0 : index
    %61 = vector.load %arg16[%c0_41, %c0_42] : memref<8x128xf32, #tpu.memory_space<vmem>>, vector<8x128xf32>
    tpu.vector_store %arg16[%c0_41, %c0_42], %60 {strides = array<i32>} : memref<8x128xf32, #tpu.memory_space<vmem>>, vector<8x128xf32>,
    return
  }
  func.func @transform_0(%arg0: i32) -> (i32, i32) {
    %c0_i32 = arith.constant 0 : i32
    %c0_i32_0 = arith.constant 0 : i32
    return %arg0, %c0_i32 : i32, i32
  }
  func.func @transform_1(%arg0: i32) -> (i32, i32) {
    %c0_i32 = arith.constant 0 : i32
    %c0_i32_0 = arith.constant 0 : i32
    %c0_i32_1 = arith.constant 0 : i32
    return %c0_i32, %c0_i32_0 : i32, i32
  }
  func.func @transform_2(%arg0: i32) -> (i32, i32) {
    %c0_i32 = arith.constant 0 : i32
    %c0_i32_0 = arith.constant 0 : i32
    %c0_i32_1 = arith.constant 0 : i32
    return %c0_i32, %c0_i32_0 : i32, i32
  }
  func.func @transform_3(%arg0: i32) -> (i32, i32) {
    %c0_i32 = arith.constant 0 : i32
    %c0_i32_0 = arith.constant 0 : i32
    %c0_i32_1 = arith.constant 0 : i32
    return %c0_i32, %c0_i32_0 : i32, i32
  }
  func.func @transform_4(%arg0: i32) -> (i32, i32) {
    %c0_i32 = arith.constant 0 : i32
    %c0_i32_0 = arith.constant 0 : i32
    %c0_i32_1 = arith.constant 0 : i32
    return %c0_i32, %c0_i32_0 : i32, i32
  }
  func.func @transform_5(%arg0: i32) -> (i32, i32) {
    %c0_i32 = arith.constant 0 : i32
    %c0_i32_0 = arith.constant 0 : i32
    %c0_i32_1 = arith.constant 0 : i32
    return %c0_i32, %c0_i32_0 : i32, i32
  }
  func.func @transform_6(%arg0: i32) -> (i32, i32) {
    %c0_i32 = arith.constant 0 : i32
    %c0_i32_0 = arith.constant 0 : i32
    %c0_i32_1 = arith.constant 0 : i32
    return %c0_i32, %c0_i32_0 : i32, i32
  }
  func.func @transform_7(%arg0: i32) -> (i32, i32) {
    %c0_i32 = arith.constant 0 : i32
    %c0_i32_0 = arith.constant 0 : i32
    %c0_i32_1 = arith.constant 0 : i32
    return %c0_i32, %c0_i32_0 : i32, i32
  }
  func.func @transform_8(%arg0: i32) -> (i32, i32) {
    %c0_i32 = arith.constant 0 : i32
    %c0_i32_0 = arith.constant 0 : i32
    %c0_i32_1 = arith.constant 0 : i32
    return %c0_i32, %c0_i32_0 : i32, i32
  }
  func.func @transform_9(%arg0: i32) -> (i32, i32) {
    %c0_i32 = arith.constant 0 : i32
    %c0_i32_0 = arith.constant 0 : i32
    %c0_i32_1 = arith.constant 0 : i32
    return %c0_i32, %c0_i32_0 : i32, i32
  }
  func.func @transform_10(%arg0: i32) -> (i32, i32) {
    %c0_i32 = arith.constant 0 : i32
    %c0_i32_0 = arith.constant 0 : i32
    %c0_i32_1 = arith.constant 0 : i32
    return %c0_i32, %c0_i32_0 : i32, i32
  }
  func.func @transform_11(%arg0: i32) -> (i32, i32) {
    %c0_i32 = arith.constant 0 : i32
    %c0_i32_0 = arith.constant 0 : i32
    %c0_i32_1 = arith.constant 0 : i32
    return %c0_i32, %c0_i32_0 : i32, i32
  }
  func.func @transform_12(%arg0: i32) -> (i32, i32) {
    %c0_i32 = arith.constant 0 : i32
    %c0_i32_0 = arith.constant 0 : i32
    %c0_i32_1 = arith.constant 0 : i32
    return %c0_i32, %c0_i32_0 : i32, i32
  }
  func.func @transform_13(%arg0: i32) -> (i32, i32) {
    %c0_i32 = arith.constant 0 : i32
    %c0_i32_0 = arith.constant 0 : i32
    %c0_i32_1 = arith.constant 0 : i32
    return %c0_i32, %c0_i32_0 : i32, i32
  }
  func.func @transform_14(%arg0: i32) -> (i32, i32) {
    %c0_i32 = arith.constant 0 : i32
    %c0_i32_0 = arith.constant 0 : i32
    %c0_i32_1 = arith.constant 0 : i32
    return %c0_i32, %c0_i32_0 : i32, i32
  }
  func.func @transform_15(%arg0: i32) -> (i32, i32) {
    %c0_i32 = arith.constant 0 : i32
    %c0_i32_0 = arith.constant 0 : i32
    return %arg0, %c0_i32 : i32, i32
  }
}

</mosaic_0001>

<bundles_post_ra>
// kernel: fully_connected_forward.1
= control target key start
LH: loop header
LB: loop body
LE: loop exit
PB: predicated region body
PF: predicated region fallthrough
CT: control target
= control target key end

     0   :  { %s1676_s0 = inlined_call_operand.hbm [shape: f32[8,32], index: 0, kind: input, shape index: {}]   ;;  %s1677_s1 = inlined_call_operand.hbm [shape: bf16[32,64], index: 1, kind: input, shape index: {}]   ;;  %s1678_s2 = inlined_call_operand.hbm [shape: f32[1,64], index: 2, kind: input, shape index: {}]   ;;  %s1679_s3 = inlined_call_operand.hbm [shape: bf16[64,128], index: 3, kind: input, shape index: {}]   ;;  %s1680_s4 = inlined_call_operand.hbm [shape: f32[1,128], index: 4, kind: input, shape index: {}]   ;;  %s1681_s5 = inlined_call_operand.vmem [shape: bf16[128,256], index: 5, kind: input, shape index: {}]   ;;  %s1682_s6 = inlined_call_operand.vmem [shape: f32[1,256], index: 6, kind: input, shape index: {}]   ;;  %s1683_s7 = inlined_call_operand.hbm [shape: bf16[256,128], index: 7, kind: input, shape index: {}]   ;;  %s1684_s8 = inlined_call_operand.hbm [shape: f32[1,128], index: 8, kind: input, shape index: {}]   ;;  %s1685_s9 = inlined_call_operand.vmem [shape: bf16[128,64], index: 9, kind: input, shape index: {}]   ;;  %s1686_s10 = inlined_call_operand.vmem [shape: f32[1,64], index: 10, kind: input, shape index: {}]   ;;  %s1687_s11 = inlined_call_operand.vmem [shape: bf16[64,32], index: 11, kind: input, shape index: {}]   ;;  %s1688_s12 = inlined_call_operand.vmem [shape: f32[1,32], index: 12, kind: input, shape index: {}]   ;;  %s1689_s13 = inlined_call_operand.vmem [shape: bf16[32,128], index: 13, kind: input, shape index: {}]   ;;  %s1690_s14 = inlined_call_operand.vmem [shape: f32[1,128], index: 14, kind: input, shape index: {}]   ;;  %s1691_s15 = inlined_call_operand.hbm [shape: f32[8,128], index: 15, kind: output, shape index: {}]  }
   0x1   :  { %1693 = sst [smem:[#allocation20_spill]] %s1691_s15 }
   0x2   :  { %20 = vsyncpa [#allocation3], 0 }
   0x3   :  { %21 = vsyncpa [#allocation6], 0 }
   0x4   :  { %22 = vsyncpa [#allocation9], 0 }
   0x5   :  { %23 = vsyncpa [#allocation12], 0 }
   0x6   :  { %24 = vsyncpa [#allocation4], 0  ;;  %s1342_s18 = smov [#allocation5]   ;;  %s1156_s22 = scalar_lea.hbm %s1677_s1, 256 }
   0x7   :  { %s40_s19 = sshll.u32 %s1342_s18, 4  ;;  %p1157_p0 = scmp.ne.s32.totalorder %s1677_s1, %s1156_s22  ;;  %s41_s19 = int_to_ptr.vmem [resolvable:$true] %s40_s19 }
   0x8   :  { %p1160_p1 = scmp.lt.u32.totalorder %s1156_s22, %s1677_s1 }
   0xa   :  { %p1162_p2 = pnand %p1160_p1, %p1157_p0 }
   0xc   :  { %1165 = shalt.err (!%p1162_p2)
}
   0xd   :  { %s1166_s27 = scalar_lea.vmem %s41_s19, 256  ;;  %p1171_p4 = scmp.lt.s32.totalorder %s41_s19, %s41_s19 }
   0xe   :  { %p1167_p3 = scmp.ne.s32.totalorder %s41_s19, %s1166_s27  ;;  %p1172_p5 = scmp.lt.s32.totalorder %s1166_s27, %s1166_s27 }
  0x10   :  { %p1173_p6 = por %p1172_p5, %p1171_p4 }
  0x12   :  { %p1174_p7 = pnand %p1173_p6, %p1167_p3 }
  0x14   :  { %1177 = shalt.err (!%p1174_p7)
}
  0x15   :  { %s1343_s28 = smov 64   ;;  %s1344_s29 = smov 4  }
  0x16   :  { %46 = dma.hbm_to_vmem [thread:$0]  %s1677_s1, 256, %s41_s19, [#allocation6], %s1343_s28, %s1343_s28, %s1344_s29  }
  0x17   :  { %s1345_s17 = smov [#allocation8]   ;;  %s1346_s20 = smov [#allocation11]  }
  0x18   :  { %s62_s18 = sshll.u32 %s1345_s17, 4  ;;  %s88_s21 = sshll.u32 %s1346_s20, 4  ;;  %s63_s18 = int_to_ptr.vmem [resolvable:$true] %s62_s18  ;;  %s89_s21 = int_to_ptr.vmem [resolvable:$true] %s88_s21 }
  0x19   :  { %s1178_s24 = scalar_lea.hbm %s1679_s3, 512 }
  0x1a   :  { %p1179_p8 = scmp.ne.s32.totalorder %s1679_s3, %s1178_s24  ;;  %p1182_p9 = scmp.lt.u32.totalorder %s1178_s24, %s1679_s3 }
  0x1c   :  { %p1184_p10 = pnand %p1182_p9, %p1179_p8 }
  0x1e   :  { %1187 = shalt.err (!%p1184_p10)
}
  0x1f   :  { %s1188_s1 = scalar_lea.vmem %s63_s18, 512  ;;  %p1193_p12 = scmp.lt.s32.totalorder %s63_s18, %s63_s18 }
  0x20   :  { %p1189_p11 = scmp.ne.s32.totalorder %s63_s18, %s1188_s1  ;;  %p1194_p13 = scmp.lt.s32.totalorder %s1188_s1, %s1188_s1 }
  0x22   :  { %p1195_p0 = por %p1194_p13, %p1193_p12 }
  0x24   :  { %p1196_p1 = pnand %p1195_p0, %p1189_p11 }
  0x26   :  { %1199 = shalt.err (!%p1196_p1)
}
  0x27   :  { %68 = dma.hbm_to_vmem [thread:$0]  %s1679_s3, 512, %s63_s18, [#allocation9], %s1343_s28, %s1343_s28, %s1344_s29  }
  0x28   :  { %s1200_s17 = scalar_lea.hbm %s1683_s7, 2048 }
  0x29   :  { %p1201_p2 = scmp.ne.s32.totalorder %s1683_s7, %s1200_s17  ;;  %p1204_p3 = scmp.lt.u32.totalorder %s1200_s17, %s1683_s7 }
  0x2b   :  { %p1206_p4 = pnand %p1204_p3, %p1201_p2 }
  0x2d   :  { %1209 = shalt.err (!%p1206_p4)
}
  0x2e   :  { %s1210_s25 = scalar_lea.vmem %s89_s21, 2048  ;;  %p1215_p6 = scmp.lt.s32.totalorder %s89_s21, %s89_s21 }
  0x2f   :  { %p1211_p5 = scmp.ne.s32.totalorder %s89_s21, %s1210_s25  ;;  %p1216_p7 = scmp.lt.s32.totalorder %s1210_s25, %s1210_s25 }
  0x31   :  { %p1217_p8 = por %p1216_p7, %p1215_p6 }
  0x33   :  { %p1218_p9 = pnand %p1217_p8, %p1211_p5 }
  0x35   :  { %1221 = shalt.err (!%p1218_p9)
}
  0x36   :  { %94 = dma.hbm_to_vmem [thread:$0]  %s1683_s7, 2048, %s89_s21, [#allocation12], %s1343_s28, %s1343_s28, %s1344_s29  }
  0x37   :  { %s1347_s26 = smov [#allocation2]   ;;  %s1348_s1 = smov [#allocation7]  }
  0x38   :  { %s31_s27 = sshll.u32 %s1347_s26, 4  ;;  %s53_s19 = sshll.u32 %s1348_s1, 4  ;;  %s32_s27 = int_to_ptr.vmem [resolvable:$true] %s31_s27  ;;  %s54_s19 = int_to_ptr.vmem [resolvable:$true] %s53_s19 }
  0x39   :  { %s1222_s15 = scalar_lea.hbm %s1676_s0, 128 }
  0x3a   :  { %p1223_p10 = scmp.ne.s32.totalorder %s1676_s0, %s1222_s15  ;;  %p1226_p11 = scmp.lt.u32.totalorder %s1222_s15, %s1676_s0 }
  0x3c   :  { %p1228_p12 = pnand %p1226_p11, %p1223_p10 }
  0x3e   :  { %1231 = shalt.err (!%p1228_p12)
}
  0x3f   :  { %s1232_s7 = scalar_lea.vmem %s32_s27, 128  ;;  %p1237_p0 = scmp.lt.s32.totalorder %s32_s27, %s32_s27 }
  0x40   :  { %p1233_p13 = scmp.ne.s32.totalorder %s32_s27, %s1232_s7  ;;  %p1238_p1 = scmp.lt.s32.totalorder %s1232_s7, %s1232_s7 }
  0x42   :  { %p1239_p2 = por %p1238_p1, %p1237_p0 }
  0x44   :  { %p1240_p3 = pnand %p1239_p2, %p1233_p13 }
  0x46   :  { %1243 = shalt.err (!%p1240_p3)
}
  0x47   :  { %34 = dma.hbm_to_vmem [thread:$0]  %s1676_s0, 128, %s32_s27, [#allocation3]  }
  0x48   :  { %s1244_s25 = scalar_lea.hbm %s1678_s2, 16 }
  0x49   :  { %p1245_p4 = scmp.ne.s32.totalorder %s1678_s2, %s1244_s25  ;;  %p1248_p5 = scmp.lt.u32.totalorder %s1244_s25, %s1678_s2 }
  0x4b   :  { %p1250_p6 = pnand %p1248_p5, %p1245_p4 }
  0x4d   :  { %1253 = shalt.err (!%p1250_p6)
}
  0x4e   :  { %s1254_s30 = scalar_lea.vmem %s54_s19, 16  ;;  %s1258_s16 = scalar_lea.vmem %s54_s19, 32 }
  0x4f   :  { %p1255_p7 = scmp.ne.s32.totalorder %s54_s19, %s1254_s30  ;;  %p1259_p8 = scmp.lt.s32.totalorder %s54_s19, %s54_s19 }
  0x50   :  { %p1260_p9 = scmp.lt.s32.totalorder %s1258_s16, %s1254_s30 }
  0x52   :  { %p1261_p10 = por %p1260_p9, %p1259_p8 }
  0x54   :  { %p1262_p11 = pnand %p1261_p10, %p1255_p7 }
  0x56   :  { %1265 = shalt.err (!%p1262_p11)
}
  0x57   :  { %56 = dma.hbm_to_vmem [thread:$0]  %s1678_s2, 16, %s54_s19, [#allocation6]  }
  0x58   :  { %s1349_s15 = smov [#allocation10]   ;;  %s1350_s20 = smov [#allocation13]  }
  0x59   :  { %s75_s17 = sshll.u32 %s1349_s15, 4  ;;  %s101_s22 = sshll.u32 %s1350_s20, 4  ;;  %s76_s17 = int_to_ptr.vmem [resolvable:$true] %s75_s17  ;;  %s102_s22 = int_to_ptr.vmem [resolvable:$true] %s101_s22 }
  0x5a   :  { %s1266_s28 = scalar_lea.hbm %s1680_s4, 16 }
  0x5b   :  { %p1267_p12 = scmp.ne.s32.totalorder %s1680_s4, %s1266_s28  ;;  %p1270_p13 = scmp.lt.u32.totalorder %s1266_s28, %s1680_s4 }
  0x5d   :  { %p1272_p0 = pnand %p1270_p13, %p1267_p12 }
  0x5f   :  { %1275 = shalt.err (!%p1272_p0)
}
  0x60   :  { %s1276_s2 = scalar_lea.vmem %s76_s17, 16  ;;  %s1280_s19 = scalar_lea.vmem %s76_s17, 32 }
  0x61   :  { %p1277_p1 = scmp.ne.s32.totalorder %s76_s17, %s1276_s2  ;;  %p1281_p2 = scmp.lt.s32.totalorder %s76_s17, %s76_s17 }
  0x62   :  { %p1282_p3 = scmp.lt.s32.totalorder %s1280_s19, %s1276_s2 }
  0x64   :  { %p1283_p4 = por %p1282_p3, %p1281_p2 }
  0x66   :  { %p1284_p5 = pnand %p1283_p4, %p1277_p1 }
  0x68   :  { %1287 = shalt.err (!%p1284_p5)
}
  0x69   :  { %78 = dma.hbm_to_vmem [thread:$0]  %s1680_s4, 16, %s76_s17, [#allocation9]  }
  0x6a   :  { %s1288_s30 = scalar_lea.hbm %s1684_s8, 16 }
  0x6b   :  { %p1289_p6 = scmp.ne.s32.totalorder %s1684_s8, %s1288_s30  ;;  %p1292_p7 = scmp.lt.u32.totalorder %s1288_s30, %s1684_s8 }
  0x6d   :  { %p1294_p8 = pnand %p1292_p7, %p1289_p6 }
  0x6f   :  { %1297 = shalt.err (!%p1294_p8)
}
  0x70   :  { %s1298_s20 = scalar_lea.vmem %s102_s22, 16  ;;  %s1302_s23 = scalar_lea.vmem %s102_s22, 32 }
  0x71   :  { %p1299_p9 = scmp.ne.s32.totalorder %s102_s22, %s1298_s20  ;;  %p1303_p10 = scmp.lt.s32.totalorder %s102_s22, %s102_s22 }
  0x72   :  { %p1304_p11 = scmp.lt.s32.totalorder %s1302_s23, %s1298_s20 }
  0x74   :  { %p1305_p12 = por %p1304_p11, %p1303_p10 }
  0x76   :  { %p1306_p13 = pnand %p1305_p12, %p1299_p9 }
  0x78   :  { %1309 = shalt.err (!%p1306_p13)
}
  0x79   :  { %104 = dma.hbm_to_vmem [thread:$0]  %s1684_s8, 16, %s102_s22, [#allocation12]  }
  0x7a   :  { %1332 = dma.done.wait [#allocation3], 128  }
  0x7b   :  { %1333 = vsyncadd [#allocation3], 4294967168 }
  0x7c   :  { %1334 = dma.done.wait [#allocation6], 272  }
  0x7d   :  { %1335 = vsyncadd [#allocation6], 4294967024 }
  0x7e   :  { %1336 = dma.done.wait [#allocation9], 528  }
  0x7f   :  { %1337 = vsyncadd [#allocation9], 4294966768 }
  0x80   :  { %1338 = dma.done.wait [#allocation12], 2064  }
  0x81   :  { %1339 = vsyncadd [#allocation12], 4294965232  ;;  %v1351_v0 = vmov 0.0   ;;  %vm1352_vm0 = vmmov 0   ;;  %v1096_v1 = vld [vmem:[#allocation5] sm:$0xff]   ;;  %v1097_v2 = vld [vmem:[#allocation5 + $0x8] sm:$0xff]  }
  0x82   :  { %1023 = vmatprep.subr.bf16.mxu0 %v1351_v0  ;;  %1027 = vmatprep.mubr.msk.bf16.mxu0 %vm1352_vm0, %v1351_v0  ;;  %v139_v3 = vld [vmem:[#allocation2] sm:$0xff]  ;;  %vm164_vm1 = vcmask 261120   ;;  %v1100_v7 = vld [vmem:[#allocation8 + $0x10] sm:$0xff]   ;;  %v1101_v8 = vld [vmem:[#allocation8 + $0x18] sm:$0xff]   ;;  %vm250_vm2 = vcmask 523264   ;;  %v1353_v34 = vmov 0  }
  0x83   :  { %1031 = vmatprep.subr.bf16.mxu1 %v1351_v0  ;;  %1039 = vmatprep.mubr.msk.bf16.mxu1 %vm1352_vm0, %v1351_v0  ;;  %v1098_v4 = vld [vmem:[#allocation8] sm:$0xff]   ;;  %v1099_v5 = vld [vmem:[#allocation8 + $0x8] sm:$0xff]   ;;  %v140_v6 = vpack.c.bf16 %v139_v3, %v139_v3  ;;  %v914_v21 = vld [vmem:[#allocation7] ss:$0 sm:$0xff] }
  0x84   :  { %1024 = vmatpush3.bf16.msra.mxu0 %v1096_v1  ;;  %1032 = vmatpush3.bf16.msra.mxu1 %v1098_v4  ;;  %v1102_v9 = vld [vmem:[%s1681_s5] ss:$8 sps:$4 sm:$0xff]   ;;  %v1104_v10 = vld [vmem:[%s1681_s5 + $0x4] ss:$8 sps:$4 sm:$0xff]   ;;  %v1107_v11 = vld [vmem:[%s1681_s5 + $0x14] ss:$8 sps:$4 sm:$0xff]  }
  0x85   :  { %1025 = vmatprep.subr.bf16.mxu0 %v1351_v0  ;;  %1033 = vmatprep.subr.bf16.mxu1 %v1351_v0  ;;  %v1105_v12 = vld [vmem:[%s1681_s5 + $0x10] ss:$8 sps:$4 sm:$0xff]   ;;  %v1110_v13 = vld [vmem:[%s1681_s5 + $0x24] ss:$8 sps:$4 sm:$0xff]   ;;  %v1108_v14 = vld [vmem:[%s1681_s5 + $0x20] ss:$8 sps:$4 sm:$0xff]  }
  0x86   :  { %v1113_v15 = vld [vmem:[%s1681_s5 + $0x34] ss:$8 sps:$4 sm:$0xff]   ;;  %v1111_v16 = vld [vmem:[%s1681_s5 + $0x30] ss:$8 sps:$4 sm:$0xff]   ;;  %v1116_v17 = vld [vmem:[%s1681_s5 + $0x44] ss:$8 sps:$4 sm:$0xff]  }
  0x87   :  { %v1114_v18 = vld [vmem:[%s1681_s5 + $0x40] ss:$8 sps:$4 sm:$0xff]   ;;  %v1119_v19 = vld [vmem:[%s1681_s5 + $0x54] ss:$8 sps:$4 sm:$0xff]   ;;  %v1117_v20 = vld [vmem:[%s1681_s5 + $0x50] ss:$8 sps:$4 sm:$0xff]  }
  0x88   :  { %1026 = vmatpush3.bf16.msra.mxu0 %v1097_v2  ;;  %1034 = vmatpush3.bf16.msra.mxu1 %v1099_v5  ;;  %v1122_v30 = vld [vmem:[%s1681_s5 + $0x64] ss:$8 sps:$4 sm:$0xff]   ;;  %v1120_v31 = vld [vmem:[%s1681_s5 + $0x60] ss:$8 sps:$4 sm:$0xff]   ;;  %v1125_v32 = vld [vmem:[%s1681_s5 + $0x74] ss:$8 sps:$4 sm:$0xff]   ;;  %v315_v2 = vlaneseq }
  0x89   :  { %1035 = vmatprep.subr.bf16.mxu1 %v1351_v0  ;;  %405 = vmatprep.subr.bf16.mxu0 %v1104_v10  ;;  %v1123_v33 = vld [vmem:[%s1681_s5 + $0x70] ss:$8 sps:$4 sm:$0xff]   ;;  %v1126_v35 = vld [vmem:[#allocation11 + $0x40] sm:$0xff]   ;;  %v1128_v37 = vld [vmem:[#allocation11 + $0x48] sm:$0xff]  }
  0x8a   :  { %v1127_v36 = vld [vmem:[#allocation11] sm:$0xff]   ;;  %v1129_v38 = vld [vmem:[#allocation11 + $0x8] sm:$0xff]   ;;  %v1130_v39 = vld [vmem:[#allocation11 + $0x50] sm:$0xff]   ;;  %v316_v3 = vshrl.u32 %v315_v2, 7 }
  0x8b   :  { %1028 = vmatmul.mubr.msk.bf16.vlgmr.msra.gmra.mrb[0].mxu0 %vm164_vm1, %v140_v6  ;;  %v1131_v40 = vld [vmem:[#allocation11 + $0x10] sm:$0xff]   ;;  %v1132_v41 = vld [vmem:[#allocation11 + $0x58] sm:$0xff]   ;;  %v1134_v43 = vld [vmem:[#allocation11 + $0x60] sm:$0xff]  }
  0x8c   :  { %1036 = vmatpush3.bf16.msra.mxu1 %v1100_v7  ;;  %406 = vmatpush1.bf16.msra.mxu0 %v1102_v9  ;;  %v1133_v42 = vld [vmem:[#allocation11 + $0x18] sm:$0xff]   ;;  %v1135_v44 = vld [vmem:[#allocation11 + $0x20] sm:$0xff]   ;;  %v1136_v45 = vld [vmem:[#allocation11 + $0x68] sm:$0xff]   ;;  %v317_v4 = vsub.s32 0, %v316_v3  ;;  %v321_v6 = vsub.s32 1, %v316_v3 }
  0x8d   :  { %1037 = vmatprep.subr.bf16.mxu1 %v1351_v0  ;;  %407 = vmatprep.subr.bf16.mxu0 %v1107_v11  ;;  %v918_v46 = vld [vmem:[#allocation10] ss:$0 sm:$0xff]  ;;  %v1137_v55 = vld [vmem:[#allocation11 + $0x28] sm:$0xff]   ;;  %v1138_v56 = vld [vmem:[#allocation11 + $0x70] sm:$0xff]  }
  0x8e   :  { %437 = vmatprep.mubr.bf16.mxu0 %v1353_v34  ;;  %v1139_v57 = vld [vmem:[#allocation11 + $0x30] sm:$0xff]   ;;  %v1140_v58 = vld [vmem:[#allocation11 + $0x78] sm:$0xff]   ;;  %v1142_v60 = vld [vmem:[%s1685_s9] sm:$0xff]  }
  0x8f   :  { %v1141_v59 = vld [vmem:[#allocation11 + $0x38] sm:$0xff]   ;;  %v1143_v61 = vld [vmem:[%s1685_s9 + $0x8] sm:$0xff]   ;;  %v1146_v1 = vld [vmem:[%s1685_s9 + $0x20] sm:$0xff]  }
  0x90   :  { %1038 = vmatpush3.bf16.msra.mxu1 %v1101_v8  ;;  %408 = vmatpush1.bf16.msra.mxu0 %v1105_v12  ;;  %v1144_v62 = vld [vmem:[%s1685_s9 + $0x10] sm:$0xff]   ;;  %v1145_v63 = vld [vmem:[%s1685_s9 + $0x18] sm:$0xff]   ;;  %v313_v5 = vld [vmem:[%s1682_s6] sm:$0x3] }
  0x91   :  { %409 = vmatprep.subr.bf16.mxu0 %v1110_v13  ;;  %984 = vmatprep.subr.bf16.mxu1 %v1126_v35  ;;  %v318_v7 = vrot.slane %v313_v5, %v317_v4  ;;  %v322_v8 = vrot.slane %v313_v5, %v321_v6 }
  0x94   :  { %410 = vmatpush1.bf16.msra.mxu0 %v1108_v14 }
  0x95   :  { %411 = vmatprep.subr.bf16.mxu0 %v1113_v15 }
  0x98   :  { %412 = vmatpush1.bf16.msra.mxu0 %v1111_v16 }
  0x99   :  { %413 = vmatprep.subr.bf16.mxu0 %v1116_v17 }
  0x9c   :  { %414 = vmatpush1.bf16.msra.mxu0 %v1114_v18 }
  0x9d   :  { %415 = vmatprep.subr.bf16.mxu0 %v1119_v19 }
  0xa0   :  { %416 = vmatpush1.bf16.msra.mxu0 %v1117_v20 }
  0xa1   :  { %417 = vmatprep.subr.bf16.mxu0 %v1122_v30 }
  0xa4   :  { %418 = vmatpush1.bf16.msra.mxu0 %v1120_v31 }
  0xa5   :  { %419 = vmatprep.subr.bf16.mxu0 %v1125_v32 }
  0xa8   :  { %420 = vmatpush1.bf16.msra.mxu0 %v1123_v33 }
  0xa9   :  { %1043 = vmatprep.subr.bf16.mxu0 %v1351_v0 }
 0x15e   :  { %v202_v22 = vpop.f32.mrb[0].mxu0 }
 0x15f   :  { %v203_v23 = vadd.f32 %v914_v21, %v202_v22  ;;  %v1029_v24 = vpop.f32.mrb[1].mxu0  ;;  %v1147_v21 = vld [vmem:[%s1685_s9 + $0x28] sm:$0xff]   ;;  %v1148_v22 = vld [vmem:[%s1685_s9 + $0x30] sm:$0xff]  }
 0x160   :  { %v205_v25 = vpop.f32.mrb[2].mxu0  ;;  %v1150_v24 = vld [vmem:[%s1687_s11] sm:$0xff]  }
 0x161   :  { %v208_v26 = vmul.f32 0.01, %v203_v23  ;;  %v1030_v27 = vpop.f32.mrb[3].mxu0  ;;  %v1151_v25 = vld [vmem:[%s1687_s11 + $0x8] sm:$0xff]  }
 0x162   :  { %v940_v27 = vld [vmem:[#allocation13] ss:$0 sm:$0xff] }
 0x163   :  { %v209_v28 = vmax.f32 %v203_v23, %v208_v26  ;;  %v1149_v23 = vld [vmem:[%s1685_s9 + $0x38] sm:$0xff]  }
 0x165   :  { %v210_v29 = vpack.c.bf16 %v209_v28, %v209_v28 }
 0x167   :  { %1040 = vmatmul.mubr.msk.bf16.vlgmr.msra.gmra.mrb[0].mxu1 %vm250_vm2, %v210_v29 }
 0x168   :  { %985 = vmatpush3.bf16.msra.mxu1 %v1127_v36  ;;  %v1152_v36 = vld [vmem:[%s1687_s11 + $0x10] sm:$0xff]  }
 0x169   :  { %986 = vmatprep.subr.bf16.mxu1 %v1128_v37  ;;  %v1153_v37 = vld [vmem:[%s1687_s11 + $0x18] sm:$0xff]  }
 0x16c   :  { %987 = vmatpush3.bf16.msra.mxu1 %v1129_v38  ;;  %v957_v38 = vld [vmem:[%s1686_s10] ss:$0 sm:$0xff] }
 0x16d   :  { %988 = vmatprep.subr.bf16.mxu1 %v1130_v39 }
 0x170   :  { %989 = vmatpush3.bf16.msra.mxu1 %v1131_v40 }
 0x171   :  { %990 = vmatprep.subr.bf16.mxu1 %v1132_v41 }
 0x174   :  { %991 = vmatpush3.bf16.msra.mxu1 %v1133_v42 }
 0x175   :  { %992 = vmatprep.subr.bf16.mxu1 %v1134_v43 }
 0x178   :  { %993 = vmatpush3.bf16.msra.mxu1 %v1135_v44 }
 0x179   :  { %994 = vmatprep.subr.bf16.mxu1 %v1136_v45 }
 0x17c   :  { %995 = vmatpush3.bf16.msra.mxu1 %v1137_v55 }
 0x17d   :  { %996 = vmatprep.subr.bf16.mxu1 %v1138_v56 }
 0x180   :  { %997 = vmatpush3.bf16.msra.mxu1 %v1139_v57 }
 0x181   :  { %998 = vmatprep.subr.bf16.mxu1 %v1140_v58 }
 0x184   :  { %999 = vmatpush3.bf16.msra.mxu1 %v1141_v59 }
 0x185   :  { %1063 = vmatprep.subr.bf16.mxu1 %v1351_v0 }
 0x23a   :  { %v288_v47 = vpop.f32.mrb[0].mxu1 }
 0x23b   :  { %v289_v48 = vadd.f32 %v918_v46, %v288_v47  ;;  %v1041_v49 = vpop.f32.mrb[1].mxu1  ;;  %v1154_v47 = vld [vmem:[%s1689_s13] sm:$0xff]  }
 0x23c   :  { %v291_v50 = vpop.f32.mrb[2].mxu1  ;;  %v966_v49 = vld [vmem:[%s1688_s12] ss:$0 sm:$0xff] }
 0x23d   :  { %v294_v51 = vmul.f32 0.01, %v289_v48  ;;  %v1042_v52 = vpop.f32.mrb[3].mxu1 }
 0x23f   :  { %v295_v53 = vmax.f32 %v289_v48, %v294_v51  ;;  %v1155_v48 = vld [vmem:[%s1689_s13 + $0x8] sm:$0xff]   ;;  %s1354_s13 = smov [#allocation14]  }
 0x240   :  { %s902_s0 = sshll.u32 %s1354_s13, 4  ;;  %s903_s0 = int_to_ptr.vmem [resolvable:$true] %s902_s0 }
 0x241   :  { %v296_v54 = vpack.c.bf16 %v295_v53, %v295_v53  ;;  %s1310_s12 = scalar_lea.vmem %s903_s0, 128  ;;  %p1315_p1 = scmp.lt.s32.totalorder %s903_s0, %s903_s0 }
 0x242   :  { %p1311_p0 = scmp.ne.s32.totalorder %s903_s0, %s1310_s12  ;;  %p1316_p2 = scmp.lt.s32.totalorder %s1310_s12, %s1310_s12 }
 0x243   :  { %438 = vmatmul.mubr.bf16.vlgmr.msra.gmra.mrb[4].mxu0 %v296_v54 }
 0x244   :  { %1059 = vmatprep.mubr.msk.bf16.mxu0 %vm1352_vm0, %v1351_v0  ;;  %1044 = vmatpush3.bf16.msra.mxu0 %v1142_v60  ;;  %p1317_p3 = por %p1316_p2, %p1315_p1 }
 0x245   :  { %1045 = vmatprep.subr.bf16.mxu0 %v1351_v0 }
 0x246   :  { %p1318_p4 = pnand %p1317_p3, %p1311_p0 }
 0x248   :  { %1046 = vmatpush3.bf16.msra.mxu0 %v1143_v61 }
 0x249   :  { %1047 = vmatprep.subr.bf16.mxu0 %v1351_v0 }
 0x24c   :  { %1048 = vmatpush3.bf16.msra.mxu0 %v1144_v62 }
 0x24d   :  { %1049 = vmatprep.subr.bf16.mxu0 %v1351_v0 }
 0x250   :  { %1050 = vmatpush3.bf16.msra.mxu0 %v1145_v63 }
 0x251   :  { %1051 = vmatprep.subr.bf16.mxu0 %v1351_v0 }
 0x254   :  { %1052 = vmatpush3.bf16.msra.mxu0 %v1146_v1 }
 0x255   :  { %1053 = vmatprep.subr.bf16.mxu0 %v1351_v0 }
 0x258   :  { %1054 = vmatpush3.bf16.msra.mxu0 %v1147_v21 }
 0x259   :  { %1055 = vmatprep.subr.bf16.mxu0 %v1351_v0 }
 0x25c   :  { %1056 = vmatpush3.bf16.msra.mxu0 %v1148_v22 }
 0x25d   :  { %1057 = vmatprep.subr.bf16.mxu0 %v1351_v0 }
 0x260   :  { %1058 = vmatpush3.bf16.msra.mxu0 %v1149_v23 }
 0x316   :  { %v439_v9 = vpop.f32.mrb[4].mxu0 }
 0x317   :  { %v440_v10 = vadd.f32 %v439_v9, %v318_v7  ;;  %v441_v11 = vpop.f32.mrb[5].mxu0 }
 0x318   :  { %v442_v12 = vadd.f32 %v441_v11, %v322_v8  ;;  %v443_v13 = vpop.f32.mrb[6].mxu0 }
 0x319   :  { %v446_v14 = vmul.f32 0.01, %v440_v10  ;;  %v444_v15 = vpop.f32.mrb[7].mxu0 }
 0x31a   :  { %v447_v16 = vmul.f32 0.01, %v442_v12 }
 0x31b   :  { %v448_v17 = vmax.f32 %v440_v10, %v446_v14 }
 0x31c   :  { %v449_v18 = vmax.f32 %v442_v12, %v447_v16 }
 0x31d   :  { %v450_v20 = vpack.c.bf16 %v448_v17, %v448_v17 }
 0x31e   :  { %v451_v19 = vpack.c.bf16 %v449_v18, %v449_v18 }
 0x320   :  { %619 = vmatprep.mubr.bf16.mxu1 %v451_v19 }
 0x321   :  { %620 = vmatmul.mubr.bf16.vlgmr.msra.gmra.mrb[4].mxu1 %v450_v20 }
 0x322   :  { %1071 = vmatprep.mubr.msk.bf16.mxu1 %vm1352_vm0, %v1351_v0  ;;  %1064 = vmatpush3.bf16.msra.mxu1 %v1150_v24 }
 0x323   :  { %1065 = vmatprep.subr.bf16.mxu1 %v1351_v0 }
 0x326   :  { %1066 = vmatpush3.bf16.msra.mxu1 %v1151_v25 }
 0x327   :  { %1067 = vmatprep.subr.bf16.mxu1 %v1351_v0 }
 0x32a   :  { %1068 = vmatpush3.bf16.msra.mxu1 %v1152_v36 }
 0x32b   :  { %1069 = vmatprep.subr.bf16.mxu1 %v1351_v0 }
 0x32e   :  { %1070 = vmatpush3.bf16.msra.mxu1 %v1153_v37 }
 0x32f   :  { %1075 = vmatprep.subr.bf16.mxu1 %v1351_v0 }
 0x3f4   :  { %v1000_v26 = vpop.f32.mrb[4].mxu1 }
 0x3f5   :  { %v1001_v28 = vpop.f32.mrb[5].mxu1 }
 0x3f6   :  { %v1002_v29 = vadd.f32 %v1001_v28, %v1000_v26  ;;  %v1003_v30 = vpop.f32.mrb[6].mxu1 }
 0x3f7   :  { %v1004_v31 = vpop.f32.mrb[7].mxu1 }
 0x3f8   :  { %v622_v32 = vadd.f32 %v1002_v29, %v940_v27 }
 0x3fa   :  { %v627_v33 = vmul.f32 0.01, %v622_v32 }
 0x3fc   :  { %v628_v34 = vmax.f32 %v622_v32, %v627_v33 }
 0x3fe   :  { %v629_v35 = vpack.c.bf16 %v628_v34, %v628_v34 }
 0x400   :  { %1060 = vmatmul.mubr.bf16.vlgmr.msra.gmra.mrb[8].mxu0 %v629_v35 }
 0x4d3   :  { %v735_v39 = vpop.f32.mrb[8].mxu0 }
 0x4d4   :  { %v736_v40 = vadd.f32 %v957_v38, %v735_v39  ;;  %v1061_v41 = vpop.f32.mrb[9].mxu0 }
 0x4d5   :  { %v738_v42 = vpop.f32.mrb[10].mxu0 }
 0x4d6   :  { %v741_v43 = vmul.f32 0.01, %v736_v40  ;;  %v1062_v44 = vpop.f32.mrb[11].mxu0 }
 0x4d8   :  { %v742_v45 = vmax.f32 %v736_v40, %v741_v43 }
 0x4da   :  { %v743_v46 = vpack.c.bf16 %v742_v45, %v742_v45 }
 0x4dc   :  { %1072 = vmatmul.mubr.msk.bf16.vlgmr.msra.gmra.mrb[8].mxu1 %vm250_vm2, %v743_v46 }
 0x4dd   :  { %1079 = vmatprep.mubr.msk.bf16.mxu1 %vm1352_vm0, %v1351_v0  ;;  %1076 = vmatpush3.bf16.msra.mxu1 %v1154_v47 }
 0x4de   :  { %1077 = vmatprep.subr.bf16.mxu1 %v1351_v0  ;;  %v972_v0 = vld [vmem:[%s1690_s14] ss:$0 sm:$0xff] }
 0x4e1   :  { %1078 = vmatpush3.bf16.msra.mxu1 %v1155_v48 }
 0x5af   :  { %v820_v50 = vpop.f32.mrb[8].mxu1 }
 0x5b0   :  { %v821_v51 = vadd.f32 %v966_v49, %v820_v50  ;;  %v1073_v52 = vpop.f32.mrb[9].mxu1 }
 0x5b1   :  { %v823_v53 = vpop.f32.mrb[10].mxu1 }
 0x5b2   :  { %v826_v54 = vmul.f32 0.01, %v821_v51  ;;  %v1074_v55 = vpop.f32.mrb[11].mxu1 }
 0x5b4   :  { %v827_v56 = vmax.f32 %v821_v51, %v826_v54 }
 0x5b6   :  { %v828_v57 = vpack.c.bf16 %v827_v56, %v827_v56 }
 0x5b8   :  { %1080 = vmatmul.mubr.msk.bf16.vlgmr.msra.gmra.mrb[12].mxu1 %vm164_vm1, %v828_v57 }
 0x68b   :  { %v889_v58 = vpop.f32.mrb[12].mxu1 }
 0x68c   :  { %v890_v59 = vadd.f32 %v972_v0, %v889_v58  ;;  %v1081_v60 = vpop.f32.mrb[13].mxu1 }
 0x68d   :  { %v892_v61 = vpop.f32.mrb[14].mxu1 }
 0x68e   :  { %895 = vst [vmem:[#allocation14] sm:$0xff] %v890_v59  ;;  %v1082_v62 = vpop.f32.mrb[15].mxu1 }
 0x68f   :  { %1321 = shalt.err (!%p1318_p4)
}
 0x690   :  { %s1694_s20 = sld [smem:[#allocation20_spill]] }
 0x696   :  { %s1322_s14 = scalar_lea.hbm %s1694_s20, 128 }
 0x697   :  { %p1323_p5 = scmp.ne.s32.totalorder %s1694_s20, %s1322_s14  ;;  %p1326_p6 = scmp.lt.u32.totalorder %s1322_s14, %s1694_s20 }
 0x699   :  { %p1328_p7 = pnand %p1326_p6, %p1323_p5 }
 0x69b   :  { %1331 = shalt.err (!%p1328_p7)
}
 0x69c   :  { %905 = dma.vmem_to_hbm [thread:$0]  %s903_s0, 128, %s1694_s20, [#allocation4]  }
 0x69d   :  { %1340 = dma.done.wait [#allocation4], 128  }
 0x69e   :  { %1341 = vsyncadd [#allocation4], 4294967168 }
 0x69f   :  { %909 = vsyncpa [#allocation3], 1 }
 0x6a0   :  { %910 = vsyncpa [#allocation6], 1 }
 0x6a1   :  { %911 = vsyncpa [#allocation9], 1 }
 0x6a2   :  { %912 = vsyncpa [#allocation12], 1 }
 0x6a3   :  { %913 = vsyncpa [#allocation4], 1 }

</bundles_post_ra>
